<compile_context>
chip_gen: v6e
topology: v6e:2x2x1
jax: 0.10.0
libtpu: 0.0.40
codegen_flags: <defaults>
</compile_context>

<pallas_src>
import jax
import jax.numpy as jnp
from jax.experimental import pallas as pl
from jax.experimental.pallas import tpu as pltpu


def _round_up(n, m):
    return (n + m - 1) // m * m


def gated_fusion_kernel(x_ref, y_ref, w1_ref, w2_ref, b2_ref, o_ref):
    x = x_ref[...]
    y = y_ref[...]
    # linear1(x) (no bias) + linear2(y) (bias): MXU matmuls in the native input
    # dtype with f32 accumulation; bias (1, P) broadcasts over rows.
    z = (
        jnp.dot(x, w1_ref[...], preferred_element_type=jnp.float32)
        + jnp.dot(y, w2_ref[...], preferred_element_type=jnp.float32)
        + b2_ref[...]
    )
    gate = jax.nn.sigmoid(z)  # EUP
    # gate*x + (1-gate)*y == y + gate*(x - y): one fewer VPU multiply.
    # 16-bit inputs blend in their own dtype (bf16 VPU on v6e/v7x, halves vreg
    # footprint); f32 inputs blend in f32.
    # TODO(synk): prefer an f32 blend on v5e (no bf16 VPU) for bf16 inputs.
    bd = x.dtype if jnp.dtype(x.dtype).itemsize == 2 else jnp.float32
    xb = x.astype(bd)
    yb = y.astype(bd)
    g = gate.astype(bd)
    o_ref[...] = (yb + g * (xb - yb)).astype(o_ref.dtype)


def gated_fusion(x, y, w1, w2, b2, *, tile_m=None, vmem_limit_bytes=None):
    """x, y: [..., D]; w1, w2: [D, P] (pre-transposed torch weights); b2: [P].

    Requires P == D (the elementwise blend only makes sense then).
    """
    orig_shape = x.shape
    D = x.shape[-1]
    P = w1.shape[-1]
    assert y.shape == x.shape
    assert w1.shape == (D, P) and w2.shape == (D, P) and b2.shape == (P,)
    assert P == D, "GatedFusion blend requires project_dim == in_features"

    x2 = x.reshape(-1, D)
    y2 = y.reshape(-1, D)
    M = x2.shape[0]

    itemsize = jnp.dtype(x.dtype).itemsize
    sub = 16 if itemsize == 2 else 8  # sublane packing of the row axis

    # ---- Lane-dense repack ---------------------------------------------------
    # Pack 128/D logical rows into one 128-lane row; weights become
    # block-diagonal [pack*D, pack*D] and the bias is tiled.  Kernel math is
    # unchanged; output stores become full-lane (no masked vst.msk).
    pack = 128 // D if (D < 128 and 128 % D == 0) else 1
    if pack > 1:
        Mp = _round_up(M, pack)  # tiny pad (< pack rows), usually zero
        if Mp != M:
            x2 = jnp.pad(x2, ((0, Mp - M), (0, 0)))
            y2 = jnp.pad(y2, ((0, Mp - M), (0, 0)))
        x2 = x2.reshape(Mp // pack, pack * D)
        y2 = y2.reshape(Mp // pack, pack * D)
        # TODO(synk): fold the kron/tile into module init so it is not redone
        # per call (it is tiny at D=32).
        w1k = jnp.kron(jnp.eye(pack, dtype=w1.dtype), w1)
        w2k = jnp.kron(jnp.eye(pack, dtype=w2.dtype), w2)
        b2k = jnp.tile(b2, pack)
    else:
        Mp = M
        w1k, w2k, b2k = w1, w2, b2
    # TODO(synk): for very large D=P (>~2K) the [D, P] weights should be tiled
    # over an extra grid axis instead of kept fully resident in VMEM.

    m_rows, d_eff = x2.shape
    p_eff = w1k.shape[-1]
    w_isz = jnp.dtype(w1.dtype).itemsize
    b_isz = jnp.dtype(b2.dtype).itemsize

    # ---- VMEM budget (generation-aware) --------------------------------------
    phys = None
    try:
        phys = getattr(pltpu.get_tpu_info(), "vmem_capacity_bytes", None)
    except Exception:
        phys = None
    if not phys:
        phys = 64 * 1024 * 1024  # conservative default: v7x has the smallest VMEM
    budget = phys - 8 * 1024 * 1024  # headroom for compiler scratch

    # Grid-invariant operands: single-buffer only when big enough to matter.
    weight_bytes = 2 * d_eff * p_eff * w_isz + p_eff * b_isz
    single_buffer_weights = weight_bytes > 4 * 1024 * 1024
    w_bufs = 1 if single_buffer_weights else 2

    def _vmem_need(tm):
        return (
            3 * 2 * tm * d_eff * itemsize         # x, y, out tiles (double-buffered)
            + w_bufs * 2 * d_eff * p_eff * w_isz  # resident W1^T, W2^T
            + w_bufs * p_eff * b_isz              # bias
            + 5 * tm * p_eff * 4                  # f32 temps: dot accs, z, gate, blend
        )

    # ---- Row tiling ----------------------------------------------------------
    if tile_m is None:
        # Byte-based tile: ~2 MiB per input row tile so each grid step moves
        # several MiB of HBM traffic (>> ~0.35 us per-step pipeline overhead).
        tile_m = max(sub, (2 * 1024 * 1024) // max(1, d_eff * itemsize))
        # Keep >= 2 grid steps when possible so ("parallel",) can shard rows
        # across both v7x TensorCores.
        if m_rows > 2 * sub:
            tile_m = min(tile_m, pl.cdiv(m_rows, 2))
        # Shrink until the per-step working set fits the VMEM budget.
        while tile_m > sub and _vmem_need(_round_up(tile_m, sub)) > budget:
            tile_m //= 2
    tile_m = _round_up(max(1, int(tile_m)), sub)
    if tile_m >= m_rows:
        tile_m = m_rows  # single full-extent block (always layout-legal)

    # No padding of M to a tile_m multiple: cdiv grid + masked ragged last block.
    grid = (pl.cdiv(m_rows, tile_m),)

    if vmem_limit_bytes is None:
        vmem_limit_bytes = max(32 * 1024 * 1024,
                               min(budget, int(1.5 * _vmem_need(tile_m))))
        vmem_limit_bytes = min(vmem_limit_bytes, budget)

    def _weight_spec(shape):
        if single_buffer_weights:
            return pl.BlockSpec(shape, lambda i: (0, 0),
                                pipeline_mode=pl.Buffered(buffer_count=1))
        return pl.BlockSpec(shape, lambda i: (0, 0))

    out = pl.pallas_call(
        gated_fusion_kernel,
        out_shape=jax.ShapeDtypeStruct((m_rows, d_eff), x.dtype),
        grid_spec=pltpu.PrefetchScalarGridSpec(
            num_scalar_prefetch=0,
            grid=grid,
            in_specs=[
                pl.BlockSpec((tile_m, d_eff), lambda i: (i, 0)),  # x rows
                pl.BlockSpec((tile_m, d_eff), lambda i: (i, 0)),  # y rows
                _weight_spec((d_eff, p_eff)),                     # (blkdiag) W1^T
                _weight_spec((d_eff, p_eff)),                     # (blkdiag) W2^T
                _weight_spec((1, p_eff)),                         # (tiled) bias
            ],
            out_specs=pl.BlockSpec((tile_m, d_eff), lambda i: (i, 0)),
        ),
        compiler_params=pltpu.CompilerParams(
            dimension_semantics=("parallel",),  # rows shard across TCs (v7x)
            vmem_limit_bytes=int(vmem_limit_bytes),
        ),
    )(x2, y2, w1k, w2k, b2k.reshape(1, p_eff))

    if pack > 1:
        out = out.reshape(Mp, D)
        if Mp != M:
            out = out[:M]
    return out.reshape(orig_shape)


def gated_fusion_ref(x, y, w1, w2, b2):
    z = x @ w1 + y @ w2 + b2
    gate = jax.nn.sigmoid(z)
    return gate * x + (1.0 - gate) * y


if __name__ == "__main__":
    key = jax.random.PRNGKey(0)
    kx, ky, kw1, kw2, kb2 = jax.random.split(key, 5)

    # Small shapes implied by the module: batch=2, seq=8,
    # x_in_features = y_in_features = project_dim = 32.
    B, S, D = 2, 8, 32
    P = D

    x = jax.random.normal(kx, (B, S, D), dtype=jnp.float32)
    y = jax.random.normal(ky, (B, S, D), dtype=jnp.float32)

    # torch stores weight as [out, in]; kernel takes the transposed [in, out].
    w1_t = (jax.random.normal(kw1, (P, D), dtype=jnp.float32) * 0.05).T  # [D, P]
    w2_t = (jax.random.normal(kw2, (P, D), dtype=jnp.float32) * 0.05).T  # [D, P]
    b2 = jax.random.normal(kb2, (P,), dtype=jnp.float32) * 0.05

    out = jax.block_until_ready(gated_fusion(x, y, w1_t, w2_t, b2))
    ref = gated_fusion_ref(x, y, w1_t, w2_t, b2)
    assert out.shape == (B, S, D)
    assert jnp.allclose(out, ref, atol=1e-5, rtol=1e-5)

    # Multi-step grid + ragged last block: M=1200 -> 300 packed rows,
    # tile_m=128 -> 3 grid steps with a masked 44-row tail.
    B2, S2 = 4, 300
    x_big = jax.random.normal(kx, (B2, S2, D), dtype=jnp.float32)
    y_big = jax.random.normal(ky, (B2, S2, D), dtype=jnp.float32)
    out_big = jax.block_until_ready(
        gated_fusion(x_big, y_big, w1_t, w2_t, b2, tile_m=128))
    ref_big = gated_fusion_ref(x_big, y_big, w1_t, w2_t, b2)
    assert out_big.shape == (B2, S2, D)
    assert jnp.allclose(out_big, ref_big, atol=1e-5, rtol=1e-5)

    # M not a multiple of the pack factor (303 rows): exercises the tiny
    # pack-pad plus the auto tile-size path (>= 2 grid steps for megacore).
    B3, S3 = 3, 101
    x_odd = jax.random.normal(kx, (B3, S3, D), dtype=jnp.float32)
    y_odd = jax.random.normal(ky, (B3, S3, D), dtype=jnp.float32)
    out_odd = jax.block_until_ready(gated_fusion(x_odd, y_odd, w1_t, w2_t, b2))
    ref_odd = gated_fusion_ref(x_odd, y_odd, w1_t, w2_t, b2)
    assert out_odd.shape == (B3, S3, D)
    assert jnp.allclose(out_odd, ref_odd, atol=1e-5, rtol=1e-5)

    print("KERNEL_OK")
</pallas_src>

<mosaic_0001>
module attributes {stable_mosaic.version = 11 : i64} {
  func.func @gated_fusion_kernel(%arg0: i32, %arg1: memref<4x128xf32, #tpu.memory_space<vmem>>, %arg2: memref<4x128xf32, #tpu.memory_space<vmem>>, %arg3: memref<128x128xf32, #tpu.memory_space<vmem>>, %arg4: memref<128x128xf32, #tpu.memory_space<vmem>>, %arg5: memref<1x128xf32, #tpu.memory_space<vmem>>, %arg6: memref<4x128xf32, #tpu.memory_space<vmem>>) attributes {dimension_semantics = [#tpu.dimension_semantics<parallel>], iteration_bounds = array<i64: 1>, scalar_prefetch = 0 : i64, scratch_operands = 0 : i64, tpu.core_type = #tpu.core_type<tc>, window_params = [{transform_indices = @transform_0, window_bounds = array<i64: 4, 128>}, {transform_indices = @transform_1, window_bounds = array<i64: 4, 128>}, {pipeline_mode = #tpu.pipeline_mode<synchronous>, transform_indices = @transform_2, window_bounds = array<i64: 128, 128>}, {pipeline_mode = #tpu.pipeline_mode<synchronous>, transform_indices = @transform_3, window_bounds = array<i64: 128, 128>}, {pipeline_mode = #tpu.pipeline_mode<synchronous>, transform_indices = @transform_4, window_bounds = array<i64: 1, 128>}, {transform_indices = @transform_5, window_bounds = array<i64: 4, 128>}]} {
    %c0 = arith.constant 0 : index
    %c0_0 = arith.constant 0 : index
    %0 = vector.load %arg1[%c0, %c0_0] : memref<4x128xf32, #tpu.memory_space<vmem>>, vector<4x128xf32>
    %c0_1 = arith.constant 0 : index
    %c0_2 = arith.constant 0 : index
    %1 = vector.load %arg2[%c0_1, %c0_2] : memref<4x128xf32, #tpu.memory_space<vmem>>, vector<4x128xf32>
    %c0_3 = arith.constant 0 : index
    %c0_4 = arith.constant 0 : index
    %2 = vector.load %arg3[%c0_3, %c0_4] : memref<128x128xf32, #tpu.memory_space<vmem>>, vector<128x128xf32>
    %cst = arith.constant dense<0.000000e+00> : vector<4x128xf32>
    %3 = tpu.matmul %0, %2, %cst {dimension_numbers = #tpu.dot_dimension_numbers<[1], [0], [0], [1], [0, 0, 1, 1], [], []>} : vector<4x128xf32>, vector<128x128xf32>, vector<4x128xf32> -> vector<4x128xf32>
    %c0_5 = arith.constant 0 : index
    %c0_6 = arith.constant 0 : index
    %4 = vector.load %arg4[%c0_5, %c0_6] : memref<128x128xf32, #tpu.memory_space<vmem>>, vector<128x128xf32>
    %cst_7 = arith.constant dense<0.000000e+00> : vector<4x128xf32>
    %5 = tpu.matmul %1, %4, %cst_7 {dimension_numbers = #tpu.dot_dimension_numbers<[1], [0], [0], [1], [0, 0, 1, 1], [], []>} : vector<4x128xf32>, vector<128x128xf32>, vector<4x128xf32> -> vector<4x128xf32>
    %6 = arith.addf %3, %5 : vector<4x128xf32>
    %c0_8 = arith.constant 0 : index
    %c0_9 = arith.constant 0 : index
    %7 = vector.load %arg5[%c0_8, %c0_9] : memref<1x128xf32, #tpu.memory_space<vmem>>, vector<1x128xf32>
    %8 = vector.broadcast %7 : vector<1x128xf32> to vector<4x128xf32>
    %9 = arith.addf %6, %8 : vector<4x128xf32>
    %10 = arith.negf %9 : vector<4x128xf32>
    %11 = math.exp %10 : vector<4x128xf32>
    %cst_10 = arith.constant 1.000000e+00 : f32
    %12 = vector.broadcast %cst_10 : f32 to vector<4x128xf32>
    %13 = arith.addf %12, %11 : vector<4x128xf32>
    %14 = arith.divf %12, %13 : vector<4x128xf32>
    %15 = arith.subf %0, %1 : vector<4x128xf32>
    %16 = arith.mulf %14, %15 : vector<4x128xf32>
    %17 = arith.addf %1, %16 : vector<4x128xf32>
    %c0_11 = arith.constant 0 : index
    %c0_12 = arith.constant 0 : index
    %18 = vector.load %arg6[%c0_11, %c0_12] : memref<4x128xf32, #tpu.memory_space<vmem>>, vector<4x128xf32>
    tpu.vector_store %arg6[%c0_11, %c0_12], %17 {strides = array<i32>} : memref<4x128xf32, #tpu.memory_space<vmem>>, vector<4x128xf32>,
    return
  }
  func.func @transform_0(%arg0: i32) -> (i32, i32) {
    %c0_i32 = arith.constant 0 : i32
    %c0_i32_0 = arith.constant 0 : i32
    return %arg0, %c0_i32 : i32, i32
  }
  func.func @transform_1(%arg0: i32) -> (i32, i32) {
    %c0_i32 = arith.constant 0 : i32
    %c0_i32_0 = arith.constant 0 : i32
    return %arg0, %c0_i32 : i32, i32
  }
  func.func @transform_2(%arg0: i32) -> (i32, i32) {
    %c0_i32 = arith.constant 0 : i32
    %c0_i32_0 = arith.constant 0 : i32
    %c0_i32_1 = arith.constant 0 : i32
    return %c0_i32, %c0_i32_0 : i32, i32
  }
  func.func @transform_3(%arg0: i32) -> (i32, i32) {
    %c0_i32 = arith.constant 0 : i32
    %c0_i32_0 = arith.constant 0 : i32
    %c0_i32_1 = arith.constant 0 : i32
    return %c0_i32, %c0_i32_0 : i32, i32
  }
  func.func @transform_4(%arg0: i32) -> (i32, i32) {
    %c0_i32 = arith.constant 0 : i32
    %c0_i32_0 = arith.constant 0 : i32
    %c0_i32_1 = arith.constant 0 : i32
    return %c0_i32, %c0_i32_0 : i32, i32
  }
  func.func @transform_5(%arg0: i32) -> (i32, i32) {
    %c0_i32 = arith.constant 0 : i32
    %c0_i32_0 = arith.constant 0 : i32
    return %arg0, %c0_i32 : i32, i32
  }
}

</mosaic_0001>

<bundles_post_ra>
// kernel: tpu_custom_call.1
= control target key start
LH: loop header
LB: loop body
LE: loop exit
PB: predicated region body
PF: predicated region fallthrough
CT: control target
= control target key end

     0   :  { %10 = vsyncpa [#allocation3], 0  ;;  %s599_s0 = inlined_call_operand.hbm [shape: f32[4,128], index: 0, kind: input, shape index: {}]   ;;  %s600_s1 = inlined_call_operand.hbm [shape: f32[4,128], index: 1, kind: input, shape index: {}]   ;;  %s601_s2 = inlined_call_operand.hbm [shape: f32[128,128], index: 2, kind: input, shape index: {}]   ;;  %s602_s3 = inlined_call_operand.hbm [shape: f32[128,128], index: 3, kind: input, shape index: {}]   ;;  %s603_s4 = inlined_call_operand.vmem [shape: f32[1,128], index: 4, kind: input, shape index: {}]   ;;  %s604_s5 = inlined_call_operand.hbm [shape: f32[4,128], index: 5, kind: output, shape index: {}]  }
   0x1   :  { %11 = vsyncpa [#allocation6], 0 }
   0x2   :  { %12 = vsyncpa [#allocation9], 0 }
   0x3   :  { %13 = vsyncpa [#allocation4], 0  ;;  %s508_s18 = smov [#allocation5]   ;;  %s509_s20 = smov [#allocation2]  }
   0x4   :  { %s30_s19 = sshll.u32 %s508_s18, 4  ;;  %s20_s21 = sshll.u32 %s509_s20, 4  ;;  %s31_s19 = int_to_ptr.vmem [resolvable:$true] %s30_s19  ;;  %s21_s21 = int_to_ptr.vmem [resolvable:$true] %s20_s21 }
   0x5   :  { %s408_s22 = scalar_lea.vmem %s31_s19, 64  ;;  %p413_p1 = scmp.lt.s32.totalorder %s31_s19, %s31_s19 }
   0x6   :  { %p409_p0 = scmp.ne.s32.totalorder %s31_s19, %s408_s22  ;;  %p414_p2 = scmp.lt.s32.totalorder %s408_s22, %s408_s22 }
   0x8   :  { %p415_p3 = por %p414_p2, %p413_p1 }
   0xa   :  { %p416_p4 = pnand %p415_p3, %p409_p0 }
   0xc   :  { %419 = shalt.err (!%p416_p4)
}
   0xd   :  { %33 = dma.hbm_to_vmem [thread:$0]  %s600_s1, 64, %s31_s19, [#allocation6]  }
   0xe   :  { %s428_s25 = scalar_lea.vmem %s21_s21, 64  ;;  %p433_p6 = scmp.lt.s32.totalorder %s21_s21, %s21_s21 }
   0xf   :  { %p429_p5 = scmp.ne.s32.totalorder %s21_s21, %s428_s25  ;;  %p434_p7 = scmp.lt.s32.totalorder %s428_s25, %s428_s25 }
  0x11   :  { %p435_p8 = por %p434_p7, %p433_p6 }
  0x13   :  { %p436_p9 = pnand %p435_p8, %p429_p5 }
  0x15   :  { %439 = shalt.err (!%p436_p9)
}
  0x16   :  { %23 = dma.hbm_to_vmem [thread:$0]  %s599_s0, 64, %s21_s21, [#allocation3]  }
  0x17   :  { %s510_s28 = smov [#allocation7]  }
  0x18   :  { %s39_s29 = sshll.u32 %s510_s28, 4  ;;  %s40_s29 = int_to_ptr.vmem [resolvable:$true] %s39_s29 }
  0x19   :  { %s448_s30 = scalar_lea.vmem %s40_s29, 2048  ;;  %p453_p11 = scmp.lt.s32.totalorder %s40_s29, %s40_s29 }
  0x1a   :  { %p449_p10 = scmp.ne.s32.totalorder %s40_s29, %s448_s30  ;;  %p454_p12 = scmp.lt.s32.totalorder %s448_s30, %s448_s30 }
  0x1c   :  { %p455_p13 = por %p454_p12, %p453_p11 }
  0x1e   :  { %p456_p0 = pnand %p455_p13, %p449_p10 }
  0x20   :  { %459 = shalt.err (!%p456_p0)
}
  0x21   :  { %s511_s1 = smov 128   ;;  %s512_s6 = smov 8  }
  0x22   :  { %45 = dma.hbm_to_vmem [thread:$0]  %s601_s2, 2048, %s40_s29, [#allocation6], %s511_s1, %s511_s1, %s512_s6  }
  0x23   :  { %s513_s9 = smov [#allocation8]  }
  0x24   :  { %s51_s10 = sshll.u32 %s513_s9, 4  ;;  %s52_s10 = int_to_ptr.vmem [resolvable:$true] %s51_s10 }
  0x25   :  { %s468_s0 = scalar_lea.vmem %s52_s10, 2048  ;;  %p473_p2 = scmp.lt.s32.totalorder %s52_s10, %s52_s10 }
  0x26   :  { %p469_p1 = scmp.ne.s32.totalorder %s52_s10, %s468_s0  ;;  %p474_p3 = scmp.lt.s32.totalorder %s468_s0, %s468_s0 }
  0x28   :  { %p475_p4 = por %p474_p3, %p473_p2 }
  0x2a   :  { %p476_p5 = pnand %p475_p4, %p469_p1 }
  0x2c   :  { %479 = shalt.err (!%p476_p5)
}
  0x2d   :  { %57 = dma.hbm_to_vmem [thread:$0]  %s602_s3, 2048, %s52_s10, [#allocation9], %s511_s1, %s511_s1, %s512_s6  }
  0x2e   :  { %500 = dma.done.wait [#allocation3], 64  }
  0x2f   :  { %501 = vsyncadd [#allocation3], 4294967232 }
  0x30   :  { %502 = dma.done.wait [#allocation6], 2112  }
  0x31   :  { %503 = vsyncadd [#allocation6], 4294965184 }
  0x32   :  { %504 = dma.done.wait [#allocation9], 2048  }
  0x33   :  { %505 = vsyncadd [#allocation9], 4294965248  ;;  %v514_v0 = vmov 0.0   ;;  %vm515_vm0 = vmmov 0   ;;  %v105_v1 = vld [vmem:[#allocation8 + $0x78] sm:$0xff]  ;;  %v104_v3 = vld [vmem:[#allocation8 + $0x70] sm:$0xff] }
  0x34   :  { %317 = vmatprep.subr.mxu0 %v514_v0  ;;  %352 = vmatprep.subr.mxu1 %v514_v0  ;;  %v89_v2 = vld [vmem:[#allocation7 + $0x78] sm:$0xff]  ;;  %v88_v4 = vld [vmem:[#allocation7 + $0x70] sm:$0xff]  ;;  %v103_v5 = vld [vmem:[#allocation8 + $0x68] sm:$0xff]  ;;  %s516_s13 = smov [#allocation10]  }
  0x35   :  { %349 = vmatprep.mubr.msk.f32.mxu0 %vm515_vm0, %v514_v0  ;;  %384 = vmatprep.mubr.msk.f32.mxu1 %vm515_vm0, %v514_v0  ;;  %v87_v6 = vld [vmem:[#allocation7 + $0x68] sm:$0xff]  ;;  %v102_v7 = vld [vmem:[#allocation8 + $0x60] sm:$0xff]  ;;  %v101_v9 = vld [vmem:[#allocation8 + $0x58] sm:$0xff]  ;;  %s270_s14 = sshll.u32 %s516_s13, 4  ;;  %s271_s14 = int_to_ptr.vmem [resolvable:$true] %s270_s14 }
  0x36   :  { %318 = vmatpush3.msra.mxu0 %v105_v1  ;;  %353 = vmatpush3.msra.mxu1 %v89_v2  ;;  %v86_v8 = vld [vmem:[#allocation7 + $0x60] sm:$0xff]  ;;  %v85_v10 = vld [vmem:[#allocation7 + $0x58] sm:$0xff]  ;;  %v100_v11 = vld [vmem:[#allocation8 + $0x50] sm:$0xff]  ;;  %s480_s15 = scalar_lea.vmem %s271_s14, 64  ;;  %p485_p7 = scmp.lt.s32.totalorder %s271_s14, %s271_s14 }
  0x37   :  { %319 = vmatprep.subr.mxu0 %v514_v0  ;;  %354 = vmatprep.subr.mxu1 %v514_v0  ;;  %v84_v12 = vld [vmem:[#allocation7 + $0x50] sm:$0xff]  ;;  %v99_v13 = vld [vmem:[#allocation8 + $0x48] sm:$0xff]  ;;  %v98_v15 = vld [vmem:[#allocation8 + $0x40] sm:$0xff]  ;;  %p481_p6 = scmp.ne.s32.totalorder %s271_s14, %s480_s15  ;;  %p486_p8 = scmp.lt.s32.totalorder %s480_s15, %s480_s15 }
  0x38   :  { %320 = vmatpush3.msra.mxu0 %v104_v3  ;;  %355 = vmatpush3.msra.mxu1 %v88_v4  ;;  %v83_v14 = vld [vmem:[#allocation7 + $0x48] sm:$0xff]  ;;  %v82_v16 = vld [vmem:[#allocation7 + $0x40] sm:$0xff]  ;;  %v97_v17 = vld [vmem:[#allocation8 + $0x38] sm:$0xff] }
  0x39   :  { %321 = vmatprep.subr.mxu0 %v514_v0  ;;  %356 = vmatprep.subr.mxu1 %v514_v0  ;;  %v81_v18 = vld [vmem:[#allocation7 + $0x38] sm:$0xff]  ;;  %v96_v19 = vld [vmem:[#allocation8 + $0x30] sm:$0xff]  ;;  %v95_v21 = vld [vmem:[#allocation8 + $0x28] sm:$0xff]  ;;  %p487_p9 = por %p486_p8, %p485_p7 }
  0x3a   :  { %322 = vmatpush3.msra.mxu0 %v103_v5  ;;  %357 = vmatpush3.msra.mxu1 %v87_v6  ;;  %v80_v20 = vld [vmem:[#allocation7 + $0x30] sm:$0xff]  ;;  %v79_v22 = vld [vmem:[#allocation7 + $0x28] sm:$0xff]  ;;  %v94_v23 = vld [vmem:[#allocation8 + $0x20] sm:$0xff] }
  0x3b   :  { %323 = vmatprep.subr.mxu0 %v514_v0  ;;  %358 = vmatprep.subr.mxu1 %v514_v0  ;;  %v78_v24 = vld [vmem:[#allocation7 + $0x20] sm:$0xff]  ;;  %v93_v25 = vld [vmem:[#allocation8 + $0x18] sm:$0xff]  ;;  %v92_v27 = vld [vmem:[#allocation8 + $0x10] sm:$0xff]  ;;  %p488_p10 = pnand %p487_p9, %p481_p6 }
  0x3c   :  { %324 = vmatpush3.msra.mxu0 %v102_v7  ;;  %359 = vmatpush3.msra.mxu1 %v86_v8  ;;  %v77_v26 = vld [vmem:[#allocation7 + $0x18] sm:$0xff]  ;;  %v76_v28 = vld [vmem:[#allocation7 + $0x10] sm:$0xff]  ;;  %v91_v29 = vld [vmem:[#allocation8 + $0x8] sm:$0xff] }
  0x3d   :  { %325 = vmatprep.subr.mxu0 %v514_v0  ;;  %360 = vmatprep.subr.mxu1 %v514_v0  ;;  %v75_v30 = vld [vmem:[#allocation7 + $0x8] sm:$0xff]  ;;  %v90_v31 = vld [vmem:[#allocation8] sm:$0xff]  ;;  %v73_v33 = vld [vmem:[#allocation5] sm:$0xf] }
  0x3e   :  { %326 = vmatpush3.msra.mxu0 %v101_v9  ;;  %361 = vmatpush3.msra.mxu1 %v85_v10  ;;  %v74_v32 = vld [vmem:[#allocation7] sm:$0xff]  ;;  %v72_v34 = vld [vmem:[#allocation2] sm:$0xf] }
  0x3f   :  { %327 = vmatprep.subr.mxu0 %v514_v0  ;;  %362 = vmatprep.subr.mxu1 %v514_v0  ;;  %v281_v37 = vld [vmem:[%s603_s4] ss:$0 sm:$0xff]  ;;  %v260_v45 = vsub.f32 %v72_v34, %v73_v33 }
  0x40   :  { %328 = vmatpush3.msra.mxu0 %v100_v11  ;;  %363 = vmatpush3.msra.mxu1 %v84_v12 }
  0x41   :  { %329 = vmatprep.subr.mxu0 %v514_v0  ;;  %364 = vmatprep.subr.mxu1 %v514_v0 }
  0x42   :  { %330 = vmatpush3.msra.mxu0 %v99_v13  ;;  %365 = vmatpush3.msra.mxu1 %v83_v14 }
  0x43   :  { %331 = vmatprep.subr.mxu0 %v514_v0  ;;  %366 = vmatprep.subr.mxu1 %v514_v0 }
  0x44   :  { %332 = vmatpush3.msra.mxu0 %v98_v15  ;;  %367 = vmatpush3.msra.mxu1 %v82_v16 }
  0x45   :  { %333 = vmatprep.subr.mxu0 %v514_v0  ;;  %368 = vmatprep.subr.mxu1 %v514_v0 }
  0x46   :  { %334 = vmatpush3.msra.mxu0 %v97_v17  ;;  %369 = vmatpush3.msra.mxu1 %v81_v18 }
  0x47   :  { %335 = vmatprep.subr.mxu0 %v514_v0  ;;  %370 = vmatprep.subr.mxu1 %v514_v0 }
  0x48   :  { %336 = vmatpush3.msra.mxu0 %v96_v19  ;;  %371 = vmatpush3.msra.mxu1 %v80_v20 }
  0x49   :  { %337 = vmatprep.subr.mxu0 %v514_v0  ;;  %372 = vmatprep.subr.mxu1 %v514_v0 }
  0x4a   :  { %338 = vmatpush3.msra.mxu0 %v95_v21  ;;  %373 = vmatpush3.msra.mxu1 %v79_v22 }
  0x4b   :  { %339 = vmatprep.subr.mxu0 %v514_v0  ;;  %374 = vmatprep.subr.mxu1 %v514_v0 }
  0x4c   :  { %340 = vmatpush3.msra.mxu0 %v94_v23  ;;  %375 = vmatpush3.msra.mxu1 %v78_v24 }
  0x4d   :  { %341 = vmatprep.subr.mxu0 %v514_v0  ;;  %376 = vmatprep.subr.mxu1 %v514_v0 }
  0x4e   :  { %342 = vmatpush3.msra.mxu0 %v93_v25  ;;  %377 = vmatpush3.msra.mxu1 %v77_v26 }
  0x4f   :  { %343 = vmatprep.subr.mxu0 %v514_v0  ;;  %378 = vmatprep.subr.mxu1 %v514_v0 }
  0x50   :  { %344 = vmatpush3.msra.mxu0 %v92_v27  ;;  %379 = vmatpush3.msra.mxu1 %v76_v28 }
  0x51   :  { %345 = vmatprep.subr.mxu0 %v514_v0  ;;  %380 = vmatprep.subr.mxu1 %v514_v0 }
  0x52   :  { %346 = vmatpush3.msra.mxu0 %v91_v29  ;;  %381 = vmatpush3.msra.mxu1 %v75_v30 }
  0x53   :  { %347 = vmatprep.subr.mxu0 %v514_v0  ;;  %382 = vmatprep.subr.mxu1 %v514_v0 }
  0x54   :  { %348 = vmatpush3.msra.mxu0 %v90_v31  ;;  %383 = vmatpush3.msra.mxu1 %v74_v32 }
  0x55   :  { %350 = vmatmul.mubr.f32.vlgmr.msra.gmra.mxu0 %v73_v33  ;;  %385 = vmatmul.mubr.f32.vlgmr.msra.gmra.mxu1 %v72_v34 }
 0x115   :  { %v172_v35 = vpop.f32.mrf.mxu0  ;;  %v242_v36 = vpop.f32.mrf.mxu1 }
 0x116   :  { %v243_v38 = vadd.f32 %v242_v36, %v172_v35 }
 0x117   :  { %v351_v39 = vpop.f32.mrf.mxu0  ;;  %v386_v40 = vpop.f32.mrf.mxu1 }
 0x118   :  { %v253_v41 = vadd.f32 %v281_v37, %v243_v38 }
 0x11a   :  { %v282_v42 = vmul.f32 -1.442695, %v253_v41 }
 0x11c   :  { %396 = vpow2.f32 %v282_v42 }
 0x129   :  { %v397_v43 = vpop.eup %396 }
 0x12a   :  { %v257_v44 = vadd.f32 1.0, %v397_v43 }
 0x12c   :  { %398 = vrcp.f32 %v257_v44 }
 0x139   :  { %v399_v46 = vpop.eup %398 }
 0x13a   :  { %v261_v47 = vmul.f32 %v399_v46, %v260_v45 }
 0x13c   :  { %v262_v48 = vadd.f32 %v261_v47, %v73_v33 }
 0x13e   :  { %263 = vst [vmem:[#allocation10] sm:$0xf] %v262_v48 }
 0x13f   :  { %491 = shalt.err (!%p488_p10)
}
 0x140   :  { %273 = dma.vmem_to_hbm [thread:$0]  %s271_s14, 64, %s604_s5, [#allocation4]  }
 0x141   :  { %506 = dma.done.wait [#allocation4], 64  }
 0x142   :  { %507 = vsyncadd [#allocation4], 4294967232 }
 0x143   :  { %277 = vsyncpa [#allocation3], 1 }
 0x144   :  { %278 = vsyncpa [#allocation6], 1 }
 0x145   :  { %279 = vsyncpa [#allocation9], 1 }
 0x146   :  { %280 = vsyncpa [#allocation4], 1 }

</bundles_post_ra>
